<compile_context>
chip_gen: v6e
topology: v6e:2x2x1
jax: 0.10.0
libtpu: 0.0.40
codegen_flags: <defaults>
</compile_context>

<pallas_src>
import functools

import jax
import jax.numpy as jnp
from jax.experimental import pallas as pl
from jax.experimental.pallas import tpu as pltpu

LN_EPS = 1e-5  # torch.nn.LayerNorm default


def _sac_critic_kernel(num_blocks,
                       obs_ref,        # (TB, obs_dim)
                       act_ref,        # (TB, act_dim)
                       w_in_obs_ref,   # (obs_dim, H)   (f32 or bf16)
                       w_in_act_ref,   # (act_dim, H)
                       b_in_ref,       # (1, H)         f32
                       ln_w_ref,       # (num_blocks, 1, H) f32
                       ln_b_ref,       # (num_blocks, 1, H) f32
                       w1_ref,         # (num_blocks, H, H)
                       b1_ref,         # (num_blocks, 1, H) f32
                       w2_ref,         # (num_blocks, H, H)
                       b2_ref,         # (num_blocks, 1, H) f32
                       w_p_ref,        # (1, H)
                       b_p_ref,        # (1, 1)         f32
                       q_ref):         # (TB, 1)
    cdtype = w_in_obs_ref.dtype  # matmul-input dtype (float32 or bfloat16)

    # input_layer: Linear(dim -> hidden), implemented as a split matmul so the
    # (obs, act) concat never has to be materialized in HBM.
    h = (jnp.dot(obs_ref[...].astype(cdtype), w_in_obs_ref[...],
                 preferred_element_type=jnp.float32)
         + jnp.dot(act_ref[...].astype(cdtype), w_in_act_ref[...],
                   preferred_element_type=jnp.float32)
         + b_in_ref[...].astype(jnp.float32))

    # Residual blocks (num_blocks is a static Python int; unrolled at trace time).
    for i in range(num_blocks):
        residual = h

        # Single-pass LayerNorm (biased variance, eps=1e-5) with the affine
        # folded into a fused scale/shift:  hn = h*scale + shift.
        mu = jnp.mean(h, axis=-1, keepdims=True)
        ms = jnp.mean(h * h, axis=-1, keepdims=True)
        var = jnp.maximum(ms - mu * mu, 0.0)
        inv = jax.lax.rsqrt(var + LN_EPS)                  # EUP slot
        gamma = ln_w_ref[i].astype(jnp.float32)            # (1, H)
        beta = ln_b_ref[i].astype(jnp.float32)             # (1, H)
        scale = gamma * inv                                # (TB, H)
        shift = beta - mu * scale                          # (TB, H)
        hn = h * scale + shift

        # fc1 + ReLU
        h1 = (jnp.dot(hn.astype(cdtype), w1_ref[i],
                      preferred_element_type=jnp.float32)
              + b1_ref[i].astype(jnp.float32))
        h1 = jnp.maximum(h1, 0.0)
        # fc2
        h2 = (jnp.dot(h1.astype(cdtype), w2_ref[i],
                      preferred_element_type=jnp.float32)
              + b2_ref[i].astype(jnp.float32))
        h = residual + h2

    # predictor: Linear(hidden -> 1) as VPU multiply + XLU lane reduction.
    w_p = w_p_ref[...].astype(jnp.float32)                 # (1, H)
    q = jnp.sum(h * w_p, axis=-1, keepdims=True) + b_p_ref[...].astype(jnp.float32)
    q_ref[...] = q.astype(q_ref.dtype)


def _const_spec(shape):
    """Full-array block with a constant index_map -> DMA'd once, stays resident."""
    nd = len(shape)
    return pl.BlockSpec(shape, lambda b, _nd=nd: (0,) * _nd)


def sac_critic_forward(observations, actions, params, *, use_bf16=False, tile_b=128):
    """Run the SACCritic forward pass with the Pallas kernel.

    observations: (B, obs_dim) f32, actions: (B, act_dim) f32.
    params: dict from init_sac_critic_params (f32 storage).
    use_bf16: cast matmul weights / inputs to bf16 (f32 accumulation).
    tile_b: batch tile size (multiple of 8); weights stay resident across tiles.
    """
    assert tile_b % 8 == 0, "tile_b must be a multiple of 8"
    B, obs_dim = observations.shape
    Ba, act_dim = actions.shape
    assert Ba == B
    num_blocks, _, H = params["ln_w"].shape

    mm_dtype = jnp.bfloat16 if use_bf16 else jnp.float32

    # Split the input-layer weight once (equivalent to concat([obs, act]) @ w_in).
    w_in = params["w_in"]
    w_in_obs = w_in[:obs_dim].astype(mm_dtype)
    w_in_act = w_in[obs_dim:].astype(mm_dtype)
    w1 = params["w1"].astype(mm_dtype)
    w2 = params["w2"].astype(mm_dtype)
    w_p = params["w_p"].reshape(1, H).astype(mm_dtype)     # (H,1) -> (1,H)
    # Biases / LayerNorm params stay in f32.
    b_in, ln_w, ln_b = params["b_in"], params["ln_w"], params["ln_b"]
    b1, b2, b_p = params["b1"], params["b2"], params["b_p"]

    # ---- batch tiling (pad B up to a multiple of 8 / TB) ----
    pB = ((B + 7) // 8) * 8
    if pB <= tile_b:
        TB = pB
    else:
        TB = tile_b
        pB = ((B + TB - 1) // TB) * TB
    if pB != B:
        pad = pB - B
        observations = jnp.pad(observations, ((0, pad), (0, 0)))
        actions = jnp.pad(actions, ((0, pad), (0, 0)))
    num_tiles = pB // TB

    const_inputs = (w_in_obs, w_in_act, b_in, ln_w, ln_b, w1, b1, w2, b2, w_p, b_p)
    inputs = (observations, actions) + const_inputs

    in_specs = [
        pl.BlockSpec((TB, obs_dim), lambda b: (b, 0)),
        pl.BlockSpec((TB, act_dim), lambda b: (b, 0)),
    ] + [_const_spec(a.shape) for a in const_inputs]
    out_spec = pl.BlockSpec((TB, 1), lambda b: (b, 0))

    # ---- explicit scoped-VMEM budget (weights + double-buffered tiles + acts) ----
    def _nbytes(a):
        return int(a.size) * a.dtype.itemsize
    weight_bytes = sum(_nbytes(a) for a in const_inputs)
    tile_bytes = (TB * (obs_dim + act_dim)) * observations.dtype.itemsize + TB * 4
    act_bytes = 6 * TB * H * 4  # compiler temporaries for h / hn / h1 / h2 etc.
    vmem_limit = 2 * (weight_bytes + tile_bytes) + act_bytes + (8 << 20)
    vmem_limit = max(16 << 20, min(int(vmem_limit), 128 << 20))

    # ---- advisory cost estimate for the XLA scheduler ----
    flops = 2 * pB * ((obs_dim + act_dim) * H + num_blocks * 2 * H * H + H)
    transcendentals = pB * num_blocks  # one rsqrt per row per LayerNorm
    bytes_accessed = (_nbytes(observations) + _nbytes(actions)
                      + weight_bytes + pB * 4)
    cost = pl.CostEstimate(flops=int(flops),
                           transcendentals=int(transcendentals),
                           bytes_accessed=int(bytes_accessed))

    kernel = functools.partial(_sac_critic_kernel, num_blocks)
    q_padded = pl.pallas_call(
        kernel,
        out_shape=jax.ShapeDtypeStruct((pB, 1), jnp.float32),
        grid_spec=pltpu.PrefetchScalarGridSpec(
            num_scalar_prefetch=0,
            grid=(num_tiles,),
            in_specs=in_specs,
            out_specs=out_spec,
        ),
        compiler_params=pltpu.CompilerParams(
            dimension_semantics=("parallel",),   # megacore split on v7x
            vmem_limit_bytes=vmem_limit,
        ),
        cost_estimate=cost,
    )(*inputs)

    return q_padded[:B]


# ----------------------- parameter init (deterministic) -----------------------

def _xavier_uniform(key, fan_in, fan_out):
    # gain=1, symmetric in (fan_in, fan_out); stored directly as (in, out).
    bound = jnp.sqrt(6.0 / (fan_in + fan_out))
    return jax.random.uniform(key, (fan_in, fan_out), jnp.float32, -bound, bound)


def init_sac_critic_params(key, dim, hidden_dim, num_blocks):
    keys = jax.random.split(key, 2 + 2 * num_blocks)
    w_in = _xavier_uniform(keys[0], dim, hidden_dim)
    b_in = jnp.zeros((1, hidden_dim), jnp.float32)

    w1 = jnp.stack([_xavier_uniform(keys[1 + i], hidden_dim, hidden_dim)
                    for i in range(num_blocks)])
    w2 = jnp.stack([_xavier_uniform(keys[1 + num_blocks + i], hidden_dim, hidden_dim)
                    for i in range(num_blocks)])
    b1 = jnp.zeros((num_blocks, 1, hidden_dim), jnp.float32)
    b2 = jnp.zeros((num_blocks, 1, hidden_dim), jnp.float32)

    ln_w = jnp.ones((num_blocks, 1, hidden_dim), jnp.float32)
    ln_b = jnp.zeros((num_blocks, 1, hidden_dim), jnp.float32)

    w_p = _xavier_uniform(keys[-1], hidden_dim, 1)
    b_p = jnp.zeros((1, 1), jnp.float32)

    return dict(w_in=w_in, b_in=b_in, ln_w=ln_w, ln_b=ln_b,
                w1=w1, b1=b1, w2=w2, b2=b2, w_p=w_p, b_p=b_p)


# ----------------------------- pure-JAX reference -----------------------------

def sac_critic_reference(observations, actions, params):
    x = jnp.concatenate([observations, actions], axis=1)
    h = x @ params["w_in"] + params["b_in"]
    num_blocks = params["ln_w"].shape[0]
    for i in range(num_blocks):
        res = h
        mu = jnp.mean(h, axis=-1, keepdims=True)
        var = jnp.mean((h - mu) ** 2, axis=-1, keepdims=True)
        hn = (h - mu) / jnp.sqrt(var + LN_EPS) * params["ln_w"][i] + params["ln_b"][i]
        h1 = jnp.maximum(hn @ params["w1"][i] + params["b1"][i], 0.0)
        h = res + (h1 @ params["w2"][i] + params["b2"][i])
    return h @ params["w_p"] + params["b_p"]


if __name__ == "__main__":
    # Small but lane-friendly shapes: hidden_dim = 128 (full vreg lane width).
    B, obs_dim, act_dim, hidden_dim, num_blocks = 64, 12, 4, 128, 2
    dim = obs_dim + act_dim

    key = jax.random.PRNGKey(0)
    k_obs, k_act, k_par = jax.random.split(key, 3)
    observations = jax.random.normal(k_obs, (B, obs_dim), jnp.float32)
    actions = jax.random.normal(k_act, (B, act_dim), jnp.float32)
    params = init_sac_critic_params(k_par, dim, hidden_dim, num_blocks)

    q_ref = sac_critic_reference(observations, actions, params)

    # 1) f32 path, multi-tile grid (tile_b=32 -> 2 batch tiles): tight tolerance.
    q_f32 = sac_critic_forward(observations, actions, params,
                               use_bf16=False, tile_b=32)
    jax.block_until_ready(q_f32)
    assert q_f32.shape == (B, 1)
    assert jnp.allclose(q_f32, q_ref, atol=1e-4, rtol=1e-4), "f32 mismatch vs reference"

    # 2) bf16-weight path, single-tile grid: loose tolerance (bf16 matmul inputs).
    q_bf16 = sac_critic_forward(observations, actions, params,
                                use_bf16=True, tile_b=256)
    jax.block_until_ready(q_bf16)
    assert q_bf16.shape == (B, 1)
    assert bool(jnp.all(jnp.isfinite(q_bf16)))
    assert jnp.allclose(q_bf16, q_ref, atol=5e-2, rtol=5e-2), "bf16 mismatch vs reference"

    # 3) ragged batch (exercises padding path), f32, default tile_b.
    Br = 13
    q_rag = sac_critic_forward(observations[:Br], actions[:Br], params,
                               use_bf16=False)
    jax.block_until_ready(q_rag)
    assert q_rag.shape == (Br, 1)
    assert jnp.allclose(q_rag, q_ref[:Br], atol=1e-4, rtol=1e-4), "ragged mismatch"

    print("KERNEL_OK")
</pallas_src>

<mosaic_0001>
module attributes {stable_mosaic.version = 11 : i64} {
  func.func @_sac_critic_kernel(%arg0: i32, %arg1: memref<32x12xf32, #tpu.memory_space<vmem>>, %arg2: memref<32x4xf32, #tpu.memory_space<vmem>>, %arg3: memref<12x128xf32, #tpu.memory_space<vmem>>, %arg4: memref<4x128xf32, #tpu.memory_space<vmem>>, %arg5: memref<1x128xf32, #tpu.memory_space<vmem>>, %arg6: memref<2x1x128xf32, #tpu.memory_space<vmem>>, %arg7: memref<2x1x128xf32, #tpu.memory_space<vmem>>, %arg8: memref<2x128x128xf32, #tpu.memory_space<vmem>>, %arg9: memref<2x1x128xf32, #tpu.memory_space<vmem>>, %arg10: memref<2x128x128xf32, #tpu.memory_space<vmem>>, %arg11: memref<2x1x128xf32, #tpu.memory_space<vmem>>, %arg12: memref<1x128xf32, #tpu.memory_space<vmem>>, %arg13: memref<1x1xf32, #tpu.memory_space<vmem>>, %arg14: memref<32x1xf32, #tpu.memory_space<vmem>>) attributes {dimension_semantics = [#tpu.dimension_semantics<parallel>], iteration_bounds = array<i64: 2>, scalar_prefetch = 0 : i64, scratch_operands = 0 : i64, tpu.core_type = #tpu.core_type<tc>, window_params = [{transform_indices = @transform_0, window_bounds = array<i64: 32, 12>}, {transform_indices = @transform_1, window_bounds = array<i64: 32, 4>}, {pipeline_mode = #tpu.pipeline_mode<synchronous>, transform_indices = @transform_2, window_bounds = array<i64: 12, 128>}, {pipeline_mode = #tpu.pipeline_mode<synchronous>, transform_indices = @transform_3, window_bounds = array<i64: 4, 128>}, {pipeline_mode = #tpu.pipeline_mode<synchronous>, transform_indices = @transform_4, window_bounds = array<i64: 1, 128>}, {pipeline_mode = #tpu.pipeline_mode<synchronous>, transform_indices = @transform_5, window_bounds = array<i64: 2, 1, 128>}, {pipeline_mode = #tpu.pipeline_mode<synchronous>, transform_indices = @transform_6, window_bounds = array<i64: 2, 1, 128>}, {pipeline_mode = #tpu.pipeline_mode<synchronous>, transform_indices = @transform_7, window_bounds = array<i64: 2, 128, 128>}, {pipeline_mode = #tpu.pipeline_mode<synchronous>, transform_indices = @transform_8, window_bounds = array<i64: 2, 1, 128>}, {pipeline_mode = #tpu.pipeline_mode<synchronous>, transform_indices = @transform_9, window_bounds = array<i64: 2, 128, 128>}, {pipeline_mode = #tpu.pipeline_mode<synchronous>, transform_indices = @transform_10, window_bounds = array<i64: 2, 1, 128>}, {pipeline_mode = #tpu.pipeline_mode<synchronous>, transform_indices = @transform_11, window_bounds = array<i64: 1, 128>}, {pipeline_mode = #tpu.pipeline_mode<synchronous>, transform_indices = @transform_12, window_bounds = array<i64: 1, 1>}, {transform_indices = @transform_13, window_bounds = array<i64: 32, 1>}]} {
    %c0 = arith.constant 0 : index
    %c0_0 = arith.constant 0 : index
    %0 = vector.load %arg1[%c0, %c0_0] : memref<32x12xf32, #tpu.memory_space<vmem>>, vector<32x12xf32>
    %c0_1 = arith.constant 0 : index
    %c0_2 = arith.constant 0 : index
    %1 = vector.load %arg3[%c0_1, %c0_2] : memref<12x128xf32, #tpu.memory_space<vmem>>, vector<12x128xf32>
    %cst = arith.constant dense<0.000000e+00> : vector<32x128xf32>
    %2 = tpu.matmul %0, %1, %cst {dimension_numbers = #tpu.dot_dimension_numbers<[1], [0], [0], [1], [0, 0, 1, 1], [], []>} : vector<32x12xf32>, vector<12x128xf32>, vector<32x128xf32> -> vector<32x128xf32>
    %c0_3 = arith.constant 0 : index
    %c0_4 = arith.constant 0 : index
    %3 = vector.load %arg2[%c0_3, %c0_4] : memref<32x4xf32, #tpu.memory_space<vmem>>, vector<32x4xf32>
    %c0_5 = arith.constant 0 : index
    %c0_6 = arith.constant 0 : index
    %4 = vector.load %arg4[%c0_5, %c0_6] : memref<4x128xf32, #tpu.memory_space<vmem>>, vector<4x128xf32>
    %cst_7 = arith.constant dense<0.000000e+00> : vector<32x128xf32>
    %5 = tpu.matmul %3, %4, %cst_7 {dimension_numbers = #tpu.dot_dimension_numbers<[1], [0], [0], [1], [0, 0, 1, 1], [], []>} : vector<32x4xf32>, vector<4x128xf32>, vector<32x128xf32> -> vector<32x128xf32>
    %6 = arith.addf %2, %5 : vector<32x128xf32>
    %c0_8 = arith.constant 0 : index
    %c0_9 = arith.constant 0 : index
    %7 = vector.load %arg5[%c0_8, %c0_9] : memref<1x128xf32, #tpu.memory_space<vmem>>, vector<1x128xf32>
    %8 = vector.broadcast %7 : vector<1x128xf32> to vector<32x128xf32>
    %9 = arith.addf %6, %8 : vector<32x128xf32>
    %cst_10 = arith.constant dense<0.000000e+00> : vector<32xf32>
    %10 = vector.multi_reduction <add>, %9, %cst_10 [1] : vector<32x128xf32> to vector<32xf32>
    %11 = vector.shape_cast %10 : vector<32xf32> to vector<32x1xf32>
    %cst_11 = arith.constant 1.280000e+02 : f32
    %12 = vector.broadcast %cst_11 : f32 to vector<32x1xf32>
    %13 = arith.divf %11, %12 : vector<32x1xf32>
    %14 = arith.mulf %9, %9 : vector<32x128xf32>
    %cst_12 = arith.constant dense<0.000000e+00> : vector<32xf32>
    %15 = vector.multi_reduction <add>, %14, %cst_12 [1] : vector<32x128xf32> to vector<32xf32>
    %16 = vector.shape_cast %15 : vector<32xf32> to vector<32x1xf32>
    %cst_13 = arith.constant 1.280000e+02 : f32
    %17 = vector.broadcast %cst_13 : f32 to vector<32x1xf32>
    %18 = arith.divf %16, %17 : vector<32x1xf32>
    %19 = arith.mulf %13, %13 : vector<32x1xf32>
    %20 = arith.subf %18, %19 : vector<32x1xf32>
    %cst_14 = arith.constant 0.000000e+00 : f32
    %21 = vector.broadcast %cst_14 : f32 to vector<32x1xf32>
    %22 = arith.maximumf %20, %21 : vector<32x1xf32>
    %cst_15 = arith.constant 9.99999974E-6 : f32
    %23 = vector.broadcast %cst_15 : f32 to vector<32x1xf32>
    %24 = arith.addf %22, %23 : vector<32x1xf32>
    %25 = math.rsqrt %24 : vector<32x1xf32>
    %c0_16 = arith.constant 0 : index
    %c0_17 = arith.constant 0 : index
    %c0_18 = arith.constant 0 : index
    %26 = vector.load %arg6[%c0_16, %c0_17, %c0_18] : memref<2x1x128xf32, #tpu.memory_space<vmem>>, vector<1x1x128xf32>
    %27 = vector.shape_cast %26 : vector<1x1x128xf32> to vector<1x128xf32>
    %c0_19 = arith.constant 0 : index
    %c0_20 = arith.constant 0 : index
    %c0_21 = arith.constant 0 : index
    %28 = vector.load %arg7[%c0_19, %c0_20, %c0_21] : memref<2x1x128xf32, #tpu.memory_space<vmem>>, vector<1x1x128xf32>
    %29 = vector.shape_cast %28 : vector<1x1x128xf32> to vector<1x128xf32>
    %30 = vector.broadcast %27 : vector<1x128xf32> to vector<32x128xf32>
    %31 = vector.broadcast %25 : vector<32x1xf32> to vector<32x128xf32>
    %32 = arith.mulf %30, %31 : vector<32x128xf32>
    %33 = vector.broadcast %13 : vector<32x1xf32> to vector<32x128xf32>
    %34 = arith.mulf %33, %32 : vector<32x128xf32>
    %35 = vector.broadcast %29 : vector<1x128xf32> to vector<32x128xf32>
    %36 = arith.subf %35, %34 : vector<32x128xf32>
    %37 = arith.mulf %9, %32 : vector<32x128xf32>
    %38 = arith.addf %37, %36 : vector<32x128xf32>
    %c0_22 = arith.constant 0 : index
    %c0_23 = arith.constant 0 : index
    %c0_24 = arith.constant 0 : index
    %39 = vector.load %arg8[%c0_22, %c0_23, %c0_24] : memref<2x128x128xf32, #tpu.memory_space<vmem>>, vector<1x128x128xf32>
    %40 = vector.shape_cast %39 : vector<1x128x128xf32> to vector<128x128xf32>
    %cst_25 = arith.constant dense<0.000000e+00> : vector<32x128xf32>
    %41 = tpu.matmul %38, %40, %cst_25 {dimension_numbers = #tpu.dot_dimension_numbers<[1], [0], [0], [1], [0, 0, 1, 1], [], []>} : vector<32x128xf32>, vector<128x128xf32>, vector<32x128xf32> -> vector<32x128xf32>
    %c0_26 = arith.constant 0 : index
    %c0_27 = arith.constant 0 : index
    %c0_28 = arith.constant 0 : index
    %42 = vector.load %arg9[%c0_26, %c0_27, %c0_28] : memref<2x1x128xf32, #tpu.memory_space<vmem>>, vector<1x1x128xf32>
    %43 = vector.shape_cast %42 : vector<1x1x128xf32> to vector<1x128xf32>
    %44 = vector.broadcast %43 : vector<1x128xf32> to vector<32x128xf32>
    %45 = arith.addf %41, %44 : vector<32x128xf32>
    %cst_29 = arith.constant 0.000000e+00 : f32
    %46 = vector.broadcast %cst_29 : f32 to vector<32x128xf32>
    %47 = arith.maximumf %45, %46 : vector<32x128xf32>
    %c0_30 = arith.constant 0 : index
    %c0_31 = arith.constant 0 : index
    %c0_32 = arith.constant 0 : index
    %48 = vector.load %arg10[%c0_30, %c0_31, %c0_32] : memref<2x128x128xf32, #tpu.memory_space<vmem>>, vector<1x128x128xf32>
    %49 = vector.shape_cast %48 : vector<1x128x128xf32> to vector<128x128xf32>
    %cst_33 = arith.constant dense<0.000000e+00> : vector<32x128xf32>
    %50 = tpu.matmul %47, %49, %cst_33 {dimension_numbers = #tpu.dot_dimension_numbers<[1], [0], [0], [1], [0, 0, 1, 1], [], []>} : vector<32x128xf32>, vector<128x128xf32>, vector<32x128xf32> -> vector<32x128xf32>
    %c0_34 = arith.constant 0 : index
    %c0_35 = arith.constant 0 : index
    %c0_36 = arith.constant 0 : index
    %51 = vector.load %arg11[%c0_34, %c0_35, %c0_36] : memref<2x1x128xf32, #tpu.memory_space<vmem>>, vector<1x1x128xf32>
    %52 = vector.shape_cast %51 : vector<1x1x128xf32> to vector<1x128xf32>
    %53 = vector.broadcast %52 : vector<1x128xf32> to vector<32x128xf32>
    %54 = arith.addf %50, %53 : vector<32x128xf32>
    %55 = arith.addf %9, %54 : vector<32x128xf32>
    %cst_37 = arith.constant dense<0.000000e+00> : vector<32xf32>
    %56 = vector.multi_reduction <add>, %55, %cst_37 [1] : vector<32x128xf32> to vector<32xf32>
    %57 = vector.shape_cast %56 : vector<32xf32> to vector<32x1xf32>
    %cst_38 = arith.constant 1.280000e+02 : f32
    %58 = vector.broadcast %cst_38 : f32 to vector<32x1xf32>
    %59 = arith.divf %57, %58 : vector<32x1xf32>
    %60 = arith.mulf %55, %55 : vector<32x128xf32>
    %cst_39 = arith.constant dense<0.000000e+00> : vector<32xf32>
    %61 = vector.multi_reduction <add>, %60, %cst_39 [1] : vector<32x128xf32> to vector<32xf32>
    %62 = vector.shape_cast %61 : vector<32xf32> to vector<32x1xf32>
    %cst_40 = arith.constant 1.280000e+02 : f32
    %63 = vector.broadcast %cst_40 : f32 to vector<32x1xf32>
    %64 = arith.divf %62, %63 : vector<32x1xf32>
    %65 = arith.mulf %59, %59 : vector<32x1xf32>
    %66 = arith.subf %64, %65 : vector<32x1xf32>
    %cst_41 = arith.constant 0.000000e+00 : f32
    %67 = vector.broadcast %cst_41 : f32 to vector<32x1xf32>
    %68 = arith.maximumf %66, %67 : vector<32x1xf32>
    %cst_42 = arith.constant 9.99999974E-6 : f32
    %69 = vector.broadcast %cst_42 : f32 to vector<32x1xf32>
    %70 = arith.addf %68, %69 : vector<32x1xf32>
    %71 = math.rsqrt %70 : vector<32x1xf32>
    %c1 = arith.constant 1 : index
    %c0_43 = arith.constant 0 : index
    %c0_44 = arith.constant 0 : index
    %72 = vector.load %arg6[%c1, %c0_43, %c0_44] : memref<2x1x128xf32, #tpu.memory_space<vmem>>, vector<1x1x128xf32>
    %73 = vector.shape_cast %72 : vector<1x1x128xf32> to vector<1x128xf32>
    %c1_45 = arith.constant 1 : index
    %c0_46 = arith.constant 0 : index
    %c0_47 = arith.constant 0 : index
    %74 = vector.load %arg7[%c1_45, %c0_46, %c0_47] : memref<2x1x128xf32, #tpu.memory_space<vmem>>, vector<1x1x128xf32>
    %75 = vector.shape_cast %74 : vector<1x1x128xf32> to vector<1x128xf32>
    %76 = vector.broadcast %73 : vector<1x128xf32> to vector<32x128xf32>
    %77 = vector.broadcast %71 : vector<32x1xf32> to vector<32x128xf32>
    %78 = arith.mulf %76, %77 : vector<32x128xf32>
    %79 = vector.broadcast %59 : vector<32x1xf32> to vector<32x128xf32>
    %80 = arith.mulf %79, %78 : vector<32x128xf32>
    %81 = vector.broadcast %75 : vector<1x128xf32> to vector<32x128xf32>
    %82 = arith.subf %81, %80 : vector<32x128xf32>
    %83 = arith.mulf %55, %78 : vector<32x128xf32>
    %84 = arith.addf %83, %82 : vector<32x128xf32>
    %c1_48 = arith.constant 1 : index
    %c0_49 = arith.constant 0 : index
    %c0_50 = arith.constant 0 : index
    %85 = vector.load %arg8[%c1_48, %c0_49, %c0_50] : memref<2x128x128xf32, #tpu.memory_space<vmem>>, vector<1x128x128xf32>
    %86 = vector.shape_cast %85 : vector<1x128x128xf32> to vector<128x128xf32>
    %cst_51 = arith.constant dense<0.000000e+00> : vector<32x128xf32>
    %87 = tpu.matmul %84, %86, %cst_51 {dimension_numbers = #tpu.dot_dimension_numbers<[1], [0], [0], [1], [0, 0, 1, 1], [], []>} : vector<32x128xf32>, vector<128x128xf32>, vector<32x128xf32> -> vector<32x128xf32>
    %c1_52 = arith.constant 1 : index
    %c0_53 = arith.constant 0 : index
    %c0_54 = arith.constant 0 : index
    %88 = vector.load %arg9[%c1_52, %c0_53, %c0_54] : memref<2x1x128xf32, #tpu.memory_space<vmem>>, vector<1x1x128xf32>
    %89 = vector.shape_cast %88 : vector<1x1x128xf32> to vector<1x128xf32>
    %90 = vector.broadcast %89 : vector<1x128xf32> to vector<32x128xf32>
    %91 = arith.addf %87, %90 : vector<32x128xf32>
    %cst_55 = arith.constant 0.000000e+00 : f32
    %92 = vector.broadcast %cst_55 : f32 to vector<32x128xf32>
    %93 = arith.maximumf %91, %92 : vector<32x128xf32>
    %c1_56 = arith.constant 1 : index
    %c0_57 = arith.constant 0 : index
    %c0_58 = arith.constant 0 : index
    %94 = vector.load %arg10[%c1_56, %c0_57, %c0_58] : memref<2x128x128xf32, #tpu.memory_space<vmem>>, vector<1x128x128xf32>
    %95 = vector.shape_cast %94 : vector<1x128x128xf32> to vector<128x128xf32>
    %cst_59 = arith.constant dense<0.000000e+00> : vector<32x128xf32>
    %96 = tpu.matmul %93, %95, %cst_59 {dimension_numbers = #tpu.dot_dimension_numbers<[1], [0], [0], [1], [0, 0, 1, 1], [], []>} : vector<32x128xf32>, vector<128x128xf32>, vector<32x128xf32> -> vector<32x128xf32>
    %c1_60 = arith.constant 1 : index
    %c0_61 = arith.constant 0 : index
    %c0_62 = arith.constant 0 : index
    %97 = vector.load %arg11[%c1_60, %c0_61, %c0_62] : memref<2x1x128xf32, #tpu.memory_space<vmem>>, vector<1x1x128xf32>
    %98 = vector.shape_cast %97 : vector<1x1x128xf32> to vector<1x128xf32>
    %99 = vector.broadcast %98 : vector<1x128xf32> to vector<32x128xf32>
    %100 = arith.addf %96, %99 : vector<32x128xf32>
    %101 = arith.addf %55, %100 : vector<32x128xf32>
    %c0_63 = arith.constant 0 : index
    %c0_64 = arith.constant 0 : index
    %102 = vector.load %arg12[%c0_63, %c0_64] : memref<1x128xf32, #tpu.memory_space<vmem>>, vector<1x128xf32>
    %103 = vector.broadcast %102 : vector<1x128xf32> to vector<32x128xf32>
    %104 = arith.mulf %101, %103 : vector<32x128xf32>
    %cst_65 = arith.constant dense<0.000000e+00> : vector<32xf32>
    %105 = vector.multi_reduction <add>, %104, %cst_65 [1] : vector<32x128xf32> to vector<32xf32>
    %106 = vector.shape_cast %105 : vector<32xf32> to vector<32x1xf32>
    %c0_66 = arith.constant 0 : index
    %c0_67 = arith.constant 0 : index
    %107 = vector.load %arg13[%c0_66, %c0_67] : memref<1x1xf32, #tpu.memory_space<vmem>>, vector<1x1xf32>
    %108 = vector.broadcast %107 : vector<1x1xf32> to vector<32x1xf32>
    %109 = arith.addf %106, %108 : vector<32x1xf32>
    %c0_68 = arith.constant 0 : index
    %c0_69 = arith.constant 0 : index
    %110 = vector.load %arg14[%c0_68, %c0_69] : memref<32x1xf32, #tpu.memory_space<vmem>>, vector<32x1xf32>
    tpu.vector_store %arg14[%c0_68, %c0_69], %109 {strides = array<i32>} : memref<32x1xf32, #tpu.memory_space<vmem>>, vector<32x1xf32>,
    return
  }
  func.func @transform_0(%arg0: i32) -> (i32, i32) {
    %c0_i32 = arith.constant 0 : i32
    %c0_i32_0 = arith.constant 0 : i32
    return %arg0, %c0_i32 : i32, i32
  }
  func.func @transform_1(%arg0: i32) -> (i32, i32) {
    %c0_i32 = arith.constant 0 : i32
    %c0_i32_0 = arith.constant 0 : i32
    return %arg0, %c0_i32 : i32, i32
  }
  func.func @transform_2(%arg0: i32) -> (i32, i32) {
    %c0_i32 = arith.constant 0 : i32
    %c0_i32_0 = arith.constant 0 : i32
    %c0_i32_1 = arith.constant 0 : i32
    return %c0_i32, %c0_i32_0 : i32, i32
  }
  func.func @transform_3(%arg0: i32) -> (i32, i32) {
    %c0_i32 = arith.constant 0 : i32
    %c0_i32_0 = arith.constant 0 : i32
    %c0_i32_1 = arith.constant 0 : i32
    return %c0_i32, %c0_i32_0 : i32, i32
  }
  func.func @transform_4(%arg0: i32) -> (i32, i32) {
    %c0_i32 = arith.constant 0 : i32
    %c0_i32_0 = arith.constant 0 : i32
    %c0_i32_1 = arith.constant 0 : i32
    return %c0_i32, %c0_i32_0 : i32, i32
  }
  func.func @transform_5(%arg0: i32) -> (i32, i32, i32) {
    %c0_i32 = arith.constant 0 : i32
    %c0_i32_0 = arith.constant 0 : i32
    %c0_i32_1 = arith.constant 0 : i32
    %c0_i32_2 = arith.constant 0 : i32
    return %c0_i32, %c0_i32_0, %c0_i32_1 : i32, i32, i32
  }
  func.func @transform_6(%arg0: i32) -> (i32, i32, i32) {
    %c0_i32 = arith.constant 0 : i32
    %c0_i32_0 = arith.constant 0 : i32
    %c0_i32_1 = arith.constant 0 : i32
    %c0_i32_2 = arith.constant 0 : i32
    return %c0_i32, %c0_i32_0, %c0_i32_1 : i32, i32, i32
  }
  func.func @transform_7(%arg0: i32) -> (i32, i32, i32) {
    %c0_i32 = arith.constant 0 : i32
    %c0_i32_0 = arith.constant 0 : i32
    %c0_i32_1 = arith.constant 0 : i32
    %c0_i32_2 = arith.constant 0 : i32
    return %c0_i32, %c0_i32_0, %c0_i32_1 : i32, i32, i32
  }
  func.func @transform_8(%arg0: i32) -> (i32, i32, i32) {
    %c0_i32 = arith.constant 0 : i32
    %c0_i32_0 = arith.constant 0 : i32
    %c0_i32_1 = arith.constant 0 : i32
    %c0_i32_2 = arith.constant 0 : i32
    return %c0_i32, %c0_i32_0, %c0_i32_1 : i32, i32, i32
  }
  func.func @transform_9(%arg0: i32) -> (i32, i32, i32) {
    %c0_i32 = arith.constant 0 : i32
    %c0_i32_0 = arith.constant 0 : i32
    %c0_i32_1 = arith.constant 0 : i32
    %c0_i32_2 = arith.constant 0 : i32
    return %c0_i32, %c0_i32_0, %c0_i32_1 : i32, i32, i32
  }
  func.func @transform_10(%arg0: i32) -> (i32, i32, i32) {
    %c0_i32 = arith.constant 0 : i32
    %c0_i32_0 = arith.constant 0 : i32
    %c0_i32_1 = arith.constant 0 : i32
    %c0_i32_2 = arith.constant 0 : i32
    return %c0_i32, %c0_i32_0, %c0_i32_1 : i32, i32, i32
  }
  func.func @transform_11(%arg0: i32) -> (i32, i32) {
    %c0_i32 = arith.constant 0 : i32
    %c0_i32_0 = arith.constant 0 : i32
    %c0_i32_1 = arith.constant 0 : i32
    return %c0_i32, %c0_i32_0 : i32, i32
  }
  func.func @transform_12(%arg0: i32) -> (i32, i32) {
    %c0_i32 = arith.constant 0 : i32
    %c0_i32_0 = arith.constant 0 : i32
    %c0_i32_1 = arith.constant 0 : i32
    return %c0_i32, %c0_i32_0 : i32, i32
  }
  func.func @transform_13(%arg0: i32) -> (i32, i32) {
    %c0_i32 = arith.constant 0 : i32
    %c0_i32_0 = arith.constant 0 : i32
    return %arg0, %c0_i32 : i32, i32
  }
}

</mosaic_0001>

<bundles_post_ra>
// kernel: tpu_custom_call.1
= control target key start
LH: loop header
LB: loop body
LE: loop exit
PB: predicated region body
PF: predicated region fallthrough
CT: control target
= control target key end

     0   :  { %s2142_s0 = inlined_call_operand.vmem [shape: f32[64,12], index: 0, kind: input, shape index: {}]   ;;  %s2143_s1 = inlined_call_operand.vmem [shape: f32[64,4], index: 1, kind: input, shape index: {}]   ;;  %s2144_s2 = inlined_call_operand.vmem [shape: f32[12,128], index: 2, kind: input, shape index: {}]   ;;  %s2145_s3 = inlined_call_operand.vmem [shape: f32[4,128], index: 3, kind: input, shape index: {}]   ;;  %s2146_s4 = inlined_call_operand.vmem [shape: f32[1,128], index: 4, kind: input, shape index: {}]   ;;  %s2147_s5 = inlined_call_operand.vmem [shape: f32[2,1,128], index: 5, kind: input, shape index: {}]   ;;  %s2148_s6 = inlined_call_operand.vmem [shape: f32[2,1,128], index: 6, kind: input, shape index: {}]   ;;  %s2149_s7 = inlined_call_operand.hbm [shape: f32[2,128,128], index: 7, kind: input, shape index: {}]   ;;  %s2150_s8 = inlined_call_operand.vmem [shape: f32[2,1,128], index: 8, kind: input, shape index: {}]   ;;  %s2151_s9 = inlined_call_operand.hbm [shape: f32[2,128,128], index: 9, kind: input, shape index: {}]   ;;  %s2152_s10 = inlined_call_operand.vmem [shape: f32[2,1,128], index: 10, kind: input, shape index: {}]   ;;  %s2153_s11 = inlined_call_operand.vmem [shape: f32[1,128], index: 11, kind: input, shape index: {}]   ;;  %s2154_s12 = inlined_call_operand.<no memory space> [shape: f32[1,1], index: 12, kind: input, shape index: {}]   ;;  %s2155_s13 = inlined_call_operand.vmem [shape: f32[64,1], index: 13, kind: output, shape index: {}]  }
   0x1   :  { %v18_v0 = vstv %s2154_s12 }
   0x2   :  { %19 = vst [vmem:[#allocation2] sm:$0x1] %v18_v0 }
   0x3   :  { %20 = vsyncpa [#allocation4], 0 }
   0x4   :  { %21 = vsyncpa [#allocation6], 0  ;;  %s1962_s27 = smov 0  }
   0x5 LB: > { %s1467_s28 = sadd.s32 4294967295, %s1883_s27   ;;  %p1469_p0 = scmp.ge.s32.totalorder %s1883_s27, 1  ;;  %s1883_s27 = sphi %s1962_s27, %s27_s27  }
   0x6   : > { %p341_p1 = scmp.lt.s32.totalorder %s1883_s27, 3  ;;  %s1885_s29 = smov [#allocation3]  }
   0x7   : > { %s368_s30 = sshll.u32 %s1885_s29, 4  ;;  %p1976_p3 = scmp.eq.s32.totalorder %s1467_s28, 0  ;;  %s369_s30 = int_to_ptr.vmem [resolvable:$true] %s368_s30 }
   0x8   : > { %p1970_p2 = pnand %p1469_p0, %p341_p1  ;;  %s1886_s15 = smov [#allocation5]  }
   0x9   : > { %s384_s16 = sshll.u32 %s1886_s15, 4  ;;  %s1828_s18 = scalar_lea.vmem %s369_s30, 4096  ;;  %s385_s16 = int_to_ptr.vmem [resolvable:$true] %s384_s16 }
   0xa   : > { %p1778_p4 = pneg %p1970_p2  ;;  %p1829_p7 = scmp.ne.s32.totalorder %s369_s30, %s1828_s18 }
   0xb   : > { %p1836_p10 = scmp.lt.s32.totalorder %s369_s30, %s369_s30  ;;  %p1837_p11 = scmp.lt.s32.totalorder %s1828_s18, %s1828_s18 }
   0xc   : > { %p1984_p5 = pnand %p1976_p3, %p1778_p4 }
   0xd   : > { %p1838_p12 = por %p1837_p11, %p1836_p10 }
   0xe   : > { %p1819_p6 = pneg %p1984_p5 }
  0x10   : > { %p1831_p8 = pnand %p1829_p7, %p1819_p6 }
  0x12   : > { %p1832_p9 = pneg %p1831_p8 }
  0x14   : > { %p1839_p13 = pnand %p1838_p12, %p1832_p9 }
  0x16   : > { %1842 = shalt.err (!%p1839_p13)
}
  0x17   : > { %s1887_s19 = smov 128   ;;  %s1888_s20 = smov 8  }
  0x18   : > { %1781 = dma.hbm_to_vmem [thread:$0]  (!%p1984_p5), %s2149_s7, 4096, %s369_s30, [#allocation4], %s1887_s19, %s1887_s19, %s1888_s20  }
  0x19   : > { %s1854_s23 = scalar_lea.vmem %s385_s16, 4096  ;;  %p1862_p7 = scmp.lt.s32.totalorder %s385_s16, %s385_s16 }
  0x1a   : > { %p1855_p0 = scmp.ne.s32.totalorder %s385_s16, %s1854_s23  ;;  %p1863_p8 = scmp.lt.s32.totalorder %s1854_s23, %s1854_s23 }
  0x1c   : > { %p1857_p1 = pnand %p1855_p0, %p1819_p6  ;;  %p1864_p10 = por %p1863_p8, %p1862_p7 }
  0x1e   : > { %p1858_p4 = pneg %p1857_p1 }
  0x20   : > { %p1865_p9 = pnand %p1864_p10, %p1858_p4 }
  0x22   : > { %1868 = shalt.err (!%p1865_p9)
}
  0x23   : > { %1784 = dma.hbm_to_vmem [thread:$0]  (!%p1984_p5), %s2151_s9, 4096, %s385_s16, [#allocation6], %s1887_s19, %s1887_s19, %s1888_s20  }
  0x24   : > { %427 = sbr.rel (%p1970_p2) target bundleno = 1547 (0x60b), region = 72 }
  0x29   : > { %1874 = dma.done.wait (%p1976_p3), [#allocation4], 4096  }
  0x2a   : > { %1876 = vsyncadd (%p1976_p3), [#allocation4], 4294963200 }
  0x2b   : > { %1878 = dma.done.wait (%p1976_p3), [#allocation6], 4096  }
  0x2c   : > { %1880 = vsyncadd (%p1976_p3), [#allocation6], 4294963200  ;;  %s1476_s26 = sshll.u32 %s1467_s28, 2  ;;  %vm522_vm0 = vcmask 1043456   ;;  %vm509_vm1 = vcmask 31744   ;;  %v502_v5 = vld [vmem:[%s2144_s2] sm:$0xff] }
  0x2d   : > { %p481_p6 = scmp.lt.s32.totalorder %s1476_s26, 7  ;;  %v508_v1 = vld [vmem:[%s2145_s3] sm:$0xf]  ;;  %v503_v2 = vld [vmem:[%s2144_s2 + $0x8] sm:$0xf]  ;;  %vm611_vm2 = vcmask 97280  }
  0x2e   : > { %1600 = vmatprep.subr.msk.mxu0 %vm522_vm0, %v508_v1  ;;  %1608 = vmatprep.subr.msk.mxu1 %vm522_vm0, %v503_v2  ;;  %v1492_v15 = vld [vmem:[%s2146_s4] ss:$0 sm:$0xff]  ;;  %v820_v34 = vld [vmem:[#allocation3 + $0x70] sm:$0xff]  ;;  %v819_v35 = vld [vmem:[#allocation3 + $0x68] sm:$0xff]  ;;  %vm1372_vm3 = vcmask 7168  }
  0x2f   : > { %s2160_s26 = smov (!%p481_p6, %s1476_s26), 7  ;;  %1601 = vmatpush3.msk.msra.mxu0 %vm522_vm0, %v508_v1  ;;  %1609 = vmatpush3.msk.msra.mxu1 %vm522_vm0, %v503_v2  ;;  %v821_v33 = vld [vmem:[#allocation3 + $0x78] sm:$0xff]  ;;  %v818_v36 = vld [vmem:[#allocation3 + $0x60] sm:$0xff]  ;;  %v816_v38 = vld [vmem:[#allocation3 + $0x50] sm:$0xff] }
  0x30   : > { %s2018_s29 = sshll.u32 %s2160_s26, 3  ;;  %1610 = vmatprep.subr.mxu1 %v502_v5  ;;  %1618 = vmatprep.subr.mxu0 %v821_v33  ;;  %v817_v37 = vld [vmem:[#allocation3 + $0x58] sm:$0xff]  ;;  %v815_v39 = vld [vmem:[#allocation3 + $0x48] sm:$0xff]  ;;  %v814_v40 = vld [vmem:[#allocation3 + $0x40] sm:$0xff] }
  0x31   : > { %s490_s15 = scalar_lea.vmem %s2143_s1, %s2018_s29  ;;  %s484_s20 = scalar_lea.vmem %s2142_s0, %s2018_s29  ;;  %1611 = vmatpush3.msra.mxu1 %v502_v5  ;;  %v813_v41 = vld [vmem:[#allocation3 + $0x38] sm:$0xff]  ;;  %v812_v42 = vld [vmem:[#allocation3 + $0x30] sm:$0xff]  ;;  %v811_v43 = vld [vmem:[#allocation3 + $0x28] sm:$0xff] }
  0x32   : > { %v504_v3 = vld [vmem:[%s490_s15] sm:$0xff]  ;;  %v505_v4 = vld [vmem:[%s490_s15 + $0x8] sm:$0xff]  ;;  %v506_v7 = vld [vmem:[%s490_s15 + $0x10] sm:$0xff] }
  0x33   : > { %v498_v6 = vld [vmem:[%s484_s20] sm:$0xff]  ;;  %1602 = vmatprep.mubr.msk.f32.mxu0 %vm509_vm1, %v504_v3  ;;  %v499_v8 = vld [vmem:[%s484_s20 + $0x8] sm:$0xff]  ;;  %v500_v9 = vld [vmem:[%s484_s20 + $0x10] sm:$0xff] }
  0x34   : > { %1603 = vmatmul.mubr.msk.f32.vlgmr.msra.gmra.mxu0 %vm509_vm1, %v505_v4  ;;  %1612 = vmatprep.mubr.msk.f32.mxu1 %vm611_vm2, %v498_v6  ;;  %v507_v10 = vld [vmem:[%s490_s15 + $0x18] sm:$0xff]  ;;  %v810_v44 = vld [vmem:[#allocation3 + $0x20] sm:$0xff]  ;;  %v807_v47 = vld [vmem:[#allocation3 + $0x8] sm:$0xff]  ;;  %s496_s15 = scalar_lea.vmem %s2155_s13, %s2018_s29 }
  0x35   : > { %1605 = vmatprep.mubr.msk.f32.mxu0 %vm509_vm1, %v506_v7  ;;  %1613 = vmatmul.mubr.msk.f32.vlgmr.msra.gmra.mxu1 %vm611_vm2, %v499_v8  ;;  %v501_v11 = vld [vmem:[%s484_s20 + $0x18] sm:$0xff]  ;;  %v806_v48 = vld [vmem:[#allocation3] sm:$0xff]  ;;  %v931_v51 = vld [vmem:[#allocation5 + $0x68] sm:$0xff] }
  0x36   : > { %1615 = vmatprep.mubr.msk.f32.mxu1 %vm611_vm2, %v500_v9  ;;  %1619 = vmatpush3.msra.mxu0 %v821_v33  ;;  %v809_v45 = vld [vmem:[#allocation3 + $0x18] sm:$0xff]  ;;  %v808_v46 = vld [vmem:[#allocation3 + $0x10] sm:$0xff]  ;;  %v930_v52 = vld [vmem:[#allocation5 + $0x60] sm:$0xff] }
  0x37   : > { %1620 = vmatprep.subr.mxu0 %v820_v34  ;;  %v933_v49 = vld [vmem:[#allocation5 + $0x78] sm:$0xff]  ;;  %v932_v50 = vld [vmem:[#allocation5 + $0x70] sm:$0xff]  ;;  %v927_v55 = vld [vmem:[#allocation5 + $0x48] sm:$0xff] }
  0x38   : > { %1606 = vmatmul.mubr.msk.f32.gmra.mxu0 %vm509_vm1, %v507_v10  ;;  %1656 = vmatprep.subr.mxu1 %v933_v49  ;;  %v929_v53 = vld [vmem:[#allocation5 + $0x58] sm:$0xff]  ;;  %v928_v54 = vld [vmem:[#allocation5 + $0x50] sm:$0xff]  ;;  %v926_v56 = vld [vmem:[#allocation5 + $0x40] sm:$0xff] }
  0x39   : > { %1616 = vmatmul.mubr.msk.f32.gmra.mxu1 %vm611_vm2, %v501_v11  ;;  %1621 = vmatpush3.msra.mxu0 %v820_v34  ;;  %v925_v57 = vld [vmem:[#allocation5 + $0x38] sm:$0xff]  ;;  %v924_v58 = vld [vmem:[#allocation5 + $0x30] sm:$0xff]  ;;  %v923_v59 = vld [vmem:[#allocation5 + $0x28] sm:$0xff] }
  0x3a   : > { %1622 = vmatprep.subr.mxu0 %v819_v35  ;;  %1657 = vmatpush3.msra.mxu1 %v933_v49  ;;  %v922_v60 = vld [vmem:[#allocation5 + $0x20] sm:$0xff]  ;;  %v1493_v33 = vld [vmem:[%s2147_s5] ss:$0 sm:$0xff] }
  0x3b   : > { %1623 = vmatpush3.msra.mxu0 %v819_v35  ;;  %1658 = vmatprep.subr.mxu1 %v932_v50 }
  0x3c   : > { %1624 = vmatprep.subr.mxu0 %v818_v36  ;;  %1659 = vmatpush3.msra.mxu1 %v932_v50 }
  0x3d   : > { %1625 = vmatpush3.msra.mxu0 %v818_v36  ;;  %1660 = vmatprep.subr.mxu1 %v931_v51 }
  0x3e   : > { %1626 = vmatprep.subr.mxu0 %v817_v37  ;;  %1661 = vmatpush3.msra.mxu1 %v931_v51 }
  0x3f   : > { %1627 = vmatpush3.msra.mxu0 %v817_v37  ;;  %1662 = vmatprep.subr.mxu1 %v930_v52 }
  0x40   : > { %1628 = vmatprep.subr.mxu0 %v816_v38  ;;  %1663 = vmatpush3.msra.mxu1 %v930_v52 }
  0x41   : > { %1629 = vmatpush3.msra.mxu0 %v816_v38  ;;  %1664 = vmatprep.subr.mxu1 %v929_v53  ;;  %v1494_v38 = vld [vmem:[%s2148_s6] ss:$0 sm:$0xff] }
  0x42   : > { %1630 = vmatprep.subr.mxu0 %v815_v39  ;;  %1665 = vmatpush3.msra.mxu1 %v929_v53 }
  0x43   : > { %1631 = vmatpush3.msra.mxu0 %v815_v39  ;;  %1666 = vmatprep.subr.mxu1 %v928_v54 }
  0x44   : > { %1632 = vmatprep.subr.mxu0 %v814_v40  ;;  %1667 = vmatpush3.msra.mxu1 %v928_v54 }
  0x45   : > { %1633 = vmatpush3.msra.mxu0 %v814_v40  ;;  %1668 = vmatprep.subr.mxu1 %v927_v55 }
  0x46   : > { %1634 = vmatprep.subr.mxu0 %v813_v41  ;;  %1669 = vmatpush3.msra.mxu1 %v927_v55 }
  0x47   : > { %1635 = vmatpush3.msra.mxu0 %v813_v41  ;;  %1670 = vmatprep.subr.mxu1 %v926_v56 }
  0x48   : > { %1636 = vmatprep.subr.mxu0 %v812_v42  ;;  %1671 = vmatpush3.msra.mxu1 %v926_v56 }
  0x49   : > { %1637 = vmatpush3.msra.mxu0 %v812_v42  ;;  %1672 = vmatprep.subr.mxu1 %v925_v57 }
  0x4a   : > { %1638 = vmatprep.subr.mxu0 %v811_v43  ;;  %1673 = vmatpush3.msra.mxu1 %v925_v57 }
  0x4b   : > { %1639 = vmatpush3.msra.mxu0 %v811_v43  ;;  %1674 = vmatprep.subr.mxu1 %v924_v58 }
  0x4c   : > { %1640 = vmatprep.subr.mxu0 %v810_v44  ;;  %1675 = vmatpush3.msra.mxu1 %v924_v58 }
  0x4d   : > { %1641 = vmatpush3.msra.mxu0 %v810_v44  ;;  %1676 = vmatprep.subr.mxu1 %v923_v59 }
  0x4e   : > { %1642 = vmatprep.subr.mxu0 %v809_v45  ;;  %1677 = vmatpush3.msra.mxu1 %v923_v59  ;;  %v921_v59 = vld [vmem:[#allocation5 + $0x18] sm:$0xff] }
  0x4f   : > { %1643 = vmatpush3.msra.mxu0 %v809_v45  ;;  %1678 = vmatprep.subr.mxu1 %v922_v60 }
  0x50   : > { %1644 = vmatprep.subr.mxu0 %v808_v46  ;;  %1679 = vmatpush3.msra.mxu1 %v922_v60  ;;  %v920_v60 = vld [vmem:[#allocation5 + $0x10] sm:$0xff] }
  0x51   : > { %1645 = vmatpush3.msra.mxu0 %v808_v46  ;;  %1680 = vmatprep.subr.mxu1 %v921_v59 }
  0x52   : > { %1646 = vmatprep.subr.mxu0 %v807_v47  ;;  %1681 = vmatpush3.msra.mxu1 %v921_v59 }
  0x53   : > { %1647 = vmatpush3.msra.mxu0 %v807_v47  ;;  %1682 = vmatprep.subr.mxu1 %v920_v60 }
  0x54   : > { %1648 = vmatprep.subr.mxu0 %v806_v48  ;;  %1683 = vmatpush3.msra.mxu1 %v920_v60 }
  0x55   : > { %1649 = vmatpush3.msra.mxu0 %v806_v48 }
  0xf4   : > { %v1604_v12 = vpop.f32.mrf.mxu0 }
  0xf5   : > { %v1614_v14 = vpop.f32.mrf.mxu1 }
  0xf6   : > { %v592_v13 = vpop.f32.mrf.mxu0  ;;  %v699_v16 = vadd.f32 %v1614_v14, %v1604_v12 }
  0xf7   : > { %v693_v18 = vpop.f32.mrf.mxu1 }
  0xf8   : > { %v1607_v17 = vpop.f32.mrf.mxu0  ;;  %v2052_v19 = vadd.f32 %v1492_v15, %v699_v16  ;;  %v694_v20 = vadd.f32 %v693_v18, %v592_v13 }
  0xf9   : > { %v1617_v21 = vpop.f32.mrf.mxu1 }
  0xfa   : > { %v602_v22 = vpop.f32.mrf.mxu0  ;;  %v2054_v23 = vadd.f32 %v1492_v15, %v694_v20  ;;  %725 = vadd.xlane.f32.xlu0 %v2052_v19  ;;  %v737_v24 = vmul.f32 %v2052_v19, %v2052_v19  ;;  %v709_v27 = vadd.f32 %v1617_v21, %v1607_v17 }
  0xfb   : > { %v703_v25 = vpop.f32.mrf.mxu1 }
  0xfc   : > { %742 = vadd.xlane.f32.xlu1 %v737_v24  ;;  %v704_v26 = vadd.f32 %v703_v25, %v602_v22  ;;  %v736_v29 = vmul.f32 %v2054_v23, %v2054_v23  ;;  %v2064_v30 = vadd.f32 %v1492_v15, %v709_v27 }
  0xfe   : > { %v2059_v28 = vadd.f32 %v1492_v15, %v704_v26  ;;  %723 = vadd.xlane.f32.xlu0 %v2054_v23  ;;  %v739_v32 = vmul.f32 %v2064_v30, %v2064_v30 }
 0x100   : > { %740 = vadd.xlane.f32.xlu1 %v736_v29  ;;  %v738_v31 = vmul.f32 %v2059_v28, %v2059_v28 }
 0x102   : > { %727 = vadd.xlane.f32.xlu0 %v2059_v28 }
 0x104   : > { %729 = vadd.xlane.f32.xlu1 %v2064_v30 }
 0x106   : > { %744 = vadd.xlane.f32.xlu0 %v738_v31 }
 0x108   : > { %746 = vadd.xlane.f32.xlu1 %v739_v32 }
 0x183   : > { %v726_v61 = vpop.xlane.xlu0 %725 }
 0x184   : > { %v733_v62 = vmul.f32 0.0078125, %v726_v61  ;;  %v919_v61 = vld [vmem:[#allocation5 + $0x8] sm:$0xff] }
 0x185   : > { %v743_v63 = vpop.xlane.xlu1 %742  ;;  %1684 = vmatprep.subr.mxu1 %v919_v61 }
 0x186   : > { %v753_v0 = vmul.f32 %v733_v62, %v733_v62  ;;  %v749_v1 = vmul.f32 0.0078125, %v743_v63  ;;  %1685 = vmatpush3.msra.mxu1 %v919_v61  ;;  %v1495_v63 = vld [vmem:[%s2150_s8] ss:$0 sm:$0xff] }
 0x187   : > { %v724_v2 = vpop.xlane.xlu0 %723 }
 0x188   : > { %v757_v3 = vsub.f32 %v749_v1, %v753_v0  ;;  %v732_v4 = vmul.f32 0.0078125, %v724_v2 }
 0x189   : > { %v741_v5 = vpop.xlane.xlu1 %740 }
 0x18a   : > { %v761_v6 = vmax.f32 %v757_v3, 0.0  ;;  %v752_v7 = vmul.f32 %v732_v4, %v732_v4  ;;  %v748_v8 = vmul.f32 0.0078125, %v741_v5 }
 0x18b   : > { %v728_v9 = vpop.xlane.xlu0 %727 }
 0x18c   : > { %v765_v10 = vadd.f32 1e-05, %v761_v6  ;;  %v756_v11 = vsub.f32 %v748_v8, %v752_v7  ;;  %v734_v12 = vmul.f32 0.0078125, %v728_v9 }
 0x18d   : > { %v730_v13 = vpop.xlane.xlu1 %729 }
 0x18e   : > { %1801 = vrsqrt.f32 %v765_v10  ;;  %v760_v14 = vmax.f32 %v756_v11, 0.0  ;;  %v735_v15 = vmul.f32 0.0078125, %v730_v13  ;;  %v754_v18 = vmul.f32 %v734_v12, %v734_v12 }
 0x18f   : > { %v745_v16 = vpop.xlane.xlu0 %744 }
 0x190   : > { %v764_v17 = vadd.f32 1e-05, %v760_v14  ;;  %v750_v20 = vmul.f32 0.0078125, %v745_v16  ;;  %v755_v22 = vmul.f32 %v735_v15, %v735_v15 }
 0x191   : > { %v747_v21 = vpop.xlane.xlu1 %746 }
 0x192   : > { %1803 = vrsqrt.f32 %v764_v17  ;;  %v758_v24 = vsub.f32 %v750_v20, %v754_v18  ;;  %v751_v25 = vmul.f32 0.0078125, %v747_v21 }
 0x194   : > { %v762_v26 = vmax.f32 %v758_v24, 0.0  ;;  %v759_v27 = vsub.f32 %v751_v25, %v755_v22 }
 0x196   : > { %v766_v29 = vadd.f32 1e-05, %v762_v26  ;;  %v763_v31 = vmax.f32 %v759_v27, 0.0 }
 0x198   : > { %1805 = vrsqrt.f32 %v766_v29  ;;  %v767_v32 = vadd.f32 1e-05, %v763_v31  ;;  %v1130_v31 = vld [vmem:[#allocation3 + $0xf8] sm:$0xff] }
 0x199   : > { %1694 = vmatprep.subr.mxu0 %v1130_v31 }
 0x19a   : > { %1807 = vrsqrt.f32 %v767_v32  ;;  %v1127_v32 = vld [vmem:[#allocation3 + $0xe0] sm:$0xff] }
 0x19b   : > { %v1802_v34 = vpop.eup %1801 }
 0x19c   : > { %v781_v35 = vmul.f32 %v1802_v34, %v1493_v33  ;;  %v1125_v34 = vld [vmem:[#allocation3 + $0xd0] sm:$0xff] }
 0x19e   : > { %v785_v37 = vmul.f32 %v781_v35, %v733_v62  ;;  %v799_v45 = vmul.f32 %v781_v35, %v2052_v19  ;;  %v918_v62 = vld [vmem:[#allocation5] sm:$0xff]  ;;  %v1124_v35 = vld [vmem:[#allocation3 + $0xc8] sm:$0xff] }
 0x19f   : > { %v1804_v36 = vpop.eup %1803  ;;  %1686 = vmatprep.subr.mxu1 %v918_v62 }
 0x1a0   : > { %v780_v39 = vmul.f32 %v1804_v36, %v1493_v33  ;;  %v795_v41 = vsub.f32 %v1494_v38, %v785_v37  ;;  %1687 = vmatpush3.msra.mxu1 %v918_v62  ;;  %v1123_v36 = vld [vmem:[#allocation3 + $0xc0] sm:$0xff]  ;;  %v1122_v37 = vld [vmem:[#allocation3 + $0xb8] sm:$0xff] }
 0x1a2   : > { %v784_v40 = vmul.f32 %v780_v39, %v732_v4  ;;  %v798_v43 = vmul.f32 %v780_v39, %v2054_v23  ;;  %v803_v49 = vadd.f32 %v799_v45, %v795_v41  ;;  %v1120_v39 = vld [vmem:[#allocation3 + $0xa8] sm:$0xff]  ;;  %v1118_v41 = vld [vmem:[#allocation3 + $0x98] sm:$0xff] }
 0x1a3   : > { %v1244_v45 = vld [vmem:[#allocation5 + $0xf8] sm:$0xff] }
 0x1a4   : > { %v794_v42 = vsub.f32 %v1494_v38, %v784_v40  ;;  %v1119_v40 = vld [vmem:[#allocation3 + $0xa0] sm:$0xff]  ;;  %1732 = vmatprep.subr.mxu1 %v1244_v45 }
 0x1a5   : > { %v1806_v44 = vpop.eup %1805 }
 0x1a6   : > { %v802_v46 = vadd.f32 %v798_v43, %v794_v42  ;;  %v782_v47 = vmul.f32 %v1806_v44, %v1493_v33  ;;  %v1117_v42 = vld [vmem:[#allocation3 + $0x90] sm:$0xff]  ;;  %v1116_v43 = vld [vmem:[#allocation3 + $0x88] sm:$0xff]  ;;  %v1115_v44 = vld [vmem:[#allocation3 + $0x80] sm:$0xff] }
 0x1a7   : > { %v1808_v48 = vpop.eup %1807 }
 0x1a8   : > { %1650 = vmatprep.mubr.f32.mxu0 %v802_v46  ;;  %v786_v50 = vmul.f32 %v782_v47, %v734_v12  ;;  %v783_v51 = vmul.f32 %v1808_v48, %v1493_v33  ;;  %v800_v53 = vmul.f32 %v782_v47, %v2059_v28  ;;  %v1496_v12 = vld [vmem:[%s2152_s10] ss:$0 sm:$0xff]  ;;  %v1243_v46 = vld [vmem:[#allocation5 + $0xf0] sm:$0xff]  ;;  %v1242_v47 = vld [vmem:[#allocation5 + $0xe8] sm:$0xff] }
 0x1a9   : > { %1651 = vmatmul.mubr.f32.vlgmr.msra.gmra.mxu0 %v803_v49  ;;  %v1126_v33 = vld [vmem:[#allocation3 + $0xd8] sm:$0xff]  ;;  %v1241_v48 = vld [vmem:[#allocation5 + $0xe0] sm:$0xff] }
 0x1aa   : > { %v796_v52 = vsub.f32 %v1494_v38, %v786_v50  ;;  %v787_v54 = vmul.f32 %v783_v51, %v735_v15  ;;  %v801_v57 = vmul.f32 %v783_v51, %v2064_v30  ;;  %1695 = vmatpush3.msra.mxu0 %v1130_v31  ;;  %v1240_v49 = vld [vmem:[#allocation5 + $0xd8] sm:$0xff]  ;;  %v1239_v50 = vld [vmem:[#allocation5 + $0xd0] sm:$0xff]  ;;  %v1238_v51 = vld [vmem:[#allocation5 + $0xc8] sm:$0xff] }
 0x1ab   : > { %v1499_v31 = vld [vmem:[%s2147_s5 + $0x1] ss:$0 sm:$0xff] }
 0x1ac   : > { %v804_v55 = vadd.f32 %v800_v53, %v796_v52  ;;  %v797_v56 = vsub.f32 %v1494_v38, %v787_v54  ;;  %v1121_v38 = vld [vmem:[#allocation3 + $0xb0] sm:$0xff]  ;;  %v1237_v52 = vld [vmem:[#allocation5 + $0xc0] sm:$0xff]  ;;  %v1236_v53 = vld [vmem:[#allocation5 + $0xb8] sm:$0xff] }
 0x1ad   : > { %v1235_v54 = vld [vmem:[#allocation5 + $0xb0] sm:$0xff] }
 0x1ae   : > { %1653 = vmatprep.mubr.f32.mxu0 %v804_v55  ;;  %v805_v58 = vadd.f32 %v801_v57, %v797_v56  ;;  %v1234_v55 = vld [vmem:[#allocation5 + $0xa8] sm:$0xff]  ;;  %v1233_v56 = vld [vmem:[#allocation5 + $0xa0] sm:$0xff] }
 0x1b0   : > { %1654 = vmatmul.mubr.f32.gmra.mxu0 %v805_v58 }
 0x269   : > { %v1652_v0 = vpop.f32.mrf.mxu0 }
 0x26a   : > { %v901_v1 = vadd.f32 %v1652_v0, %v1495_v63 }
 0x26b   : > { %v895_v2 = vpop.f32.mrf.mxu0 }
 0x26c   : > { %v896_v3 = vadd.f32 %v1495_v63, %v895_v2  ;;  %v915_v5 = vmax.f32 %v901_v1, 0.0 }
 0x26e   : > { %v914_v4 = vmax.f32 %v896_v3, 0.0 }
 0x270   : > { %v1655_v6 = vpop.f32.mrf.mxu0  ;;  %1688 = vmatprep.mubr.f32.mxu1 %v914_v4 }
 0x271   : > { %1689 = vmatmul.mubr.f32.vlgmr.msra.gmra.mxu1 %v915_v5  ;;  %v911_v7 = vadd.f32 %v1655_v6, %v1495_v63 }
 0x272   : > { %v905_v8 = vpop.f32.mrf.mxu0  ;;  %1733 = vmatpush3.msra.mxu1 %v1244_v45 }
 0x273   : > { %v906_v9 = vadd.f32 %v1495_v63, %v905_v8  ;;  %v917_v11 = vmax.f32 %v911_v7, 0.0  ;;  %1734 = vmatprep.subr.mxu1 %v1243_v46 }
 0x274   : > { %1735 = vmatpush3.msra.mxu1 %v1243_v46 }
 0x275   : > { %v916_v10 = vmax.f32 %v906_v9, 0.0  ;;  %1736 = vmatprep.subr.mxu1 %v1242_v47 }
 0x276   : > { %1737 = vmatpush3.msra.mxu1 %v1242_v47 }
 0x277   : > { %1691 = vmatprep.mubr.f32.mxu1 %v916_v10  ;;  %1738 = vmatprep.subr.mxu1 %v1241_v48 }
 0x278   : > { %1692 = vmatmul.mubr.f32.gmra.mxu1 %v917_v11 }
 0x279   : > { %1739 = vmatpush3.msra.mxu1 %v1241_v48 }
 0x27a   : > { %1740 = vmatprep.subr.mxu1 %v1240_v49 }
 0x27b   : > { %1741 = vmatpush3.msra.mxu1 %v1240_v49 }
 0x27c   : > { %1742 = vmatprep.subr.mxu1 %v1239_v50 }
 0x27d   : > { %1743 = vmatpush3.msra.mxu1 %v1239_v50 }
 0x27e   : > { %1744 = vmatprep.subr.mxu1 %v1238_v51 }
 0x27f   : > { %1745 = vmatpush3.msra.mxu1 %v1238_v51 }
 0x280   : > { %1746 = vmatprep.subr.mxu1 %v1237_v52 }
 0x281   : > { %1747 = vmatpush3.msra.mxu1 %v1237_v52 }
 0x282   : > { %1748 = vmatprep.subr.mxu1 %v1236_v53 }
 0x283   : > { %1749 = vmatpush3.msra.mxu1 %v1236_v53 }
 0x284   : > { %1750 = vmatprep.subr.mxu1 %v1235_v54 }
 0x285   : > { %1751 = vmatpush3.msra.mxu1 %v1235_v54 }
 0x286   : > { %1752 = vmatprep.subr.mxu1 %v1234_v55 }
 0x287   : > { %1753 = vmatpush3.msra.mxu1 %v1234_v55  ;;  %v1232_v55 = vld [vmem:[#allocation5 + $0x98] sm:$0xff] }
 0x288   : > { %1754 = vmatprep.subr.mxu1 %v1233_v56 }
 0x289   : > { %1755 = vmatpush3.msra.mxu1 %v1233_v56  ;;  %v1231_v56 = vld [vmem:[#allocation5 + $0x90] sm:$0xff] }
 0x28a   : > { %1756 = vmatprep.subr.mxu1 %v1232_v55 }
 0x28b   : > { %1757 = vmatpush3.msra.mxu1 %v1232_v55 }
 0x28c   : > { %1758 = vmatprep.subr.mxu1 %v1231_v56 }
 0x28d   : > { %1759 = vmatpush3.msra.mxu1 %v1231_v56 }
 0x331   : > { %v1690_v13 = vpop.f32.mrf.mxu1 }
 0x332   : > { %v1013_v14 = vadd.f32 %v1690_v13, %v1496_v12 }
 0x333   : > { %v1007_v15 = vpop.f32.mrf.mxu1 }
 0x334   : > { %v2089_v16 = vadd.f32 %v1013_v14, %v2052_v19  ;;  %v1008_v17 = vadd.f32 %v1496_v12, %v1007_v15 }
 0x336   : > { %v2092_v18 = vadd.f32 %v1008_v17, %v2054_v23  ;;  %1032 = vadd.xlane.f32.xlu1 %v2089_v16  ;;  %v1043_v21 = vmul.f32 %v2089_v16, %v2089_v16 }
 0x338   : > { %1030 = vadd.xlane.f32.xlu0 %v2092_v18  ;;  %v1693_v20 = vpop.f32.mrf.mxu1  ;;  %v1042_v25 = vmul.f32 %v2092_v18, %v2092_v18 }
 0x339   : > { %v1023_v22 = vadd.f32 %v1693_v20, %v1496_v12 }
 0x33a   : > { %1048 = vadd.xlane.f32.xlu1 %v1043_v21  ;;  %v1017_v24 = vpop.f32.mrf.mxu1 }
 0x33b   : > { %v2101_v19 = vadd.f32 %v1023_v22, %v2064_v30  ;;  %v1018_v26 = vadd.f32 %v1496_v12, %v1017_v24  ;;  %v1129_v30 = vld [vmem:[#allocation3 + $0xf0] sm:$0xff] }
 0x33c   : > { %1046 = vadd.xlane.f32.xlu0 %v1042_v25  ;;  %1696 = vmatprep.subr.mxu0 %v1129_v30 }
 0x33d   : > { %v2104_v23 = vadd.f32 %v1018_v26, %v2059_v28  ;;  %v1045_v27 = vmul.f32 %v2101_v19, %v2101_v19  ;;  %1697 = vmatpush3.msra.mxu0 %v1129_v30  ;;  %v1128_v28 = vld [vmem:[#allocation3 + $0xe8] sm:$0xff] }
 0x33e   : > { %1036 = vadd.xlane.f32.xlu1 %v2101_v19  ;;  %1698 = vmatprep.subr.mxu0 %v1128_v28 }
 0x33f   : > { %v1044_v29 = vmul.f32 %v2104_v23, %v2104_v23  ;;  %1699 = vmatpush3.msra.mxu0 %v1128_v28 }
 0x340   : > { %1034 = vadd.xlane.f32.xlu0 %v2104_v23  ;;  %1700 = vmatprep.subr.mxu0 %v1127_v32 }
 0x341   : > { %1701 = vmatpush3.msra.mxu0 %v1127_v32 }
 0x342   : > { %1052 = vadd.xlane.f32.xlu1 %v1045_v27  ;;  %1702 = vmatprep.subr.mxu0 %v1126_v33 }
 0x343   : > { %1703 = vmatpush3.msra.mxu0 %v1126_v33  ;;  %v1500_v33 = vld [vmem:[%s2148_s6 + $0x1] ss:$0 sm:$0xff] }
 0x344   : > { %1050 = vadd.xlane.f32.xlu0 %v1044_v29  ;;  %1704 = vmatprep.subr.mxu0 %v1125_v34 }
 0x345   : > { %1705 = vmatpush3.msra.mxu0 %v1125_v34 }
 0x346   : > { %1706 = vmatprep.subr.mxu0 %v1124_v35 }
 0x347   : > { %1707 = vmatpush3.msra.mxu0 %v1124_v35 }
 0x348   : > { %1708 = vmatprep.subr.mxu0 %v1123_v36 }
 0x349   : > { %1709 = vmatpush3.msra.mxu0 %v1123_v36 }
 0x34a   : > { %1710 = vmatprep.subr.mxu0 %v1122_v37 }
 0x34b   : > { %1711 = vmatpush3.msra.mxu0 %v1122_v37 }
 0x34c   : > { %1712 = vmatprep.subr.mxu0 %v1121_v38 }
 0x34d   : > { %1713 = vmatpush3.msra.mxu0 %v1121_v38 }
 0x34e   : > { %1714 = vmatprep.subr.mxu0 %v1120_v39 }
 0x34f   : > { %1715 = vmatpush3.msra.mxu0 %v1120_v39 }
 0x350   : > { %1716 = vmatprep.subr.mxu0 %v1119_v40 }
 0x351   : > { %1717 = vmatpush3.msra.mxu0 %v1119_v40 }
 0x352   : > { %1718 = vmatprep.subr.mxu0 %v1118_v41 }
 0x353   : > { %1719 = vmatpush3.msra.mxu0 %v1118_v41 }
 0x354   : > { %1720 = vmatprep.subr.mxu0 %v1117_v42 }
 0x355   : > { %1721 = vmatpush3.msra.mxu0 %v1117_v42 }
 0x356   : > { %1722 = vmatprep.subr.mxu0 %v1116_v43 }
 0x357   : > { %1723 = vmatpush3.msra.mxu0 %v1116_v43 }
 0x358   : > { %1724 = vmatprep.subr.mxu0 %v1115_v44 }
 0x359   : > { %1725 = vmatpush3.msra.mxu0 %v1115_v44 }
 0x3bf   : > { %v1033_v57 = vpop.xlane.xlu1 %1032 }
 0x3c0   : > { %v1039_v58 = vmul.f32 0.0078125, %v1033_v57  ;;  %v1230_v57 = vld [vmem:[#allocation5 + $0x88] sm:$0xff] }
 0x3c1   : > { %v1031_v59 = vpop.xlane.xlu0 %1030  ;;  %1760 = vmatprep.subr.mxu1 %v1230_v57 }
 0x3c2   : > { %v1038_v60 = vmul.f32 0.0078125, %v1031_v59  ;;  %v1059_v62 = vmul.f32 %v1039_v58, %v1039_v58  ;;  %1761 = vmatpush3.msra.mxu1 %v1230_v57  ;;  %v1502_v59 = vld [vmem:[%s2150_s8 + $0x1] ss:$0 sm:$0xff] }
 0x3c3   : > { %v1049_v61 = vpop.xlane.xlu1 %1048 }
 0x3c4   : > { %v1055_v63 = vmul.f32 0.0078125, %v1049_v61  ;;  %v1058_v1 = vmul.f32 %v1038_v60, %v1038_v60 }
 0x3c5   : > { %v1047_v0 = vpop.xlane.xlu0 %1046 }
 0x3c6   : > { %v1063_v2 = vsub.f32 %v1055_v63, %v1059_v62  ;;  %v1054_v3 = vmul.f32 0.0078125, %v1047_v0 }
 0x3c7   : > { %v1037_v4 = vpop.xlane.xlu1 %1036 }
 0x3c8   : > { %v1067_v5 = vmax.f32 %v1063_v2, 0.0  ;;  %v1062_v6 = vsub.f32 %v1054_v3, %v1058_v1  ;;  %v1041_v7 = vmul.f32 0.0078125, %v1037_v4 }
 0x3c9   : > { %v1035_v8 = vpop.xlane.xlu0 %1034 }
 0x3ca   : > { %v1071_v9 = vadd.f32 1e-05, %v1067_v5  ;;  %v1066_v10 = vmax.f32 %v1062_v6, 0.0  ;;  %v1040_v11 = vmul.f32 0.0078125, %v1035_v8  ;;  %v1061_v14 = vmul.f32 %v1041_v7, %v1041_v7  ;;  %v1504_v8 = vld [vmem:[%s2152_s10 + $0x1] ss:$0 sm:$0xff] }
 0x3cb   : > { %v1053_v12 = vpop.xlane.xlu1 %1052 }
 0x3cc   : > { %1809 = vrsqrt.f32 %v1071_v9  ;;  %v1070_v13 = vadd.f32 1e-05, %v1066_v10  ;;  %v1057_v15 = vmul.f32 0.0078125, %v1053_v12  ;;  %v1060_v20 = vmul.f32 %v1040_v11, %v1040_v11  ;;  %v1505_v12 = vld [vmem:[%s2153_s11] ss:$0 sm:$0xff] }
 0x3cd   : > { %v1051_v17 = vpop.xlane.xlu0 %1050 }
 0x3ce   : > { %1811 = vrsqrt.f32 %v1070_v13  ;;  %v1065_v21 = vsub.f32 %v1057_v15, %v1061_v14  ;;  %v1056_v22 = vmul.f32 0.0078125, %v1051_v17 }
 0x3d0   : > { %v1069_v24 = vmax.f32 %v1065_v21, 0.0  ;;  %v1064_v25 = vsub.f32 %v1056_v22, %v1060_v20 }
 0x3d2   : > { %v1073_v26 = vadd.f32 1e-05, %v1069_v24  ;;  %v1068_v27 = vmax.f32 %v1064_v25, 0.0 }
 0x3d4   : > { %1813 = vrsqrt.f32 %v1073_v26  ;;  %v1072_v29 = vadd.f32 1e-05, %v1068_v27 }
 0x3d6   : > { %1815 = vrsqrt.f32 %v1072_v29 }
 0x3d9   : > { %v1810_v30 = vpop.eup %1809 }
 0x3da   : > { %v1089_v28 = vmul.f32 %v1810_v30, %v1499_v31 }
 0x3db   : > { %v1812_v32 = vpop.eup %1811 }
 0x3dc   : > { %v1088_v34 = vmul.f32 %v1812_v32, %v1499_v31  ;;  %v1093_v35 = vmul.f32 %v1089_v28, %v1039_v58  ;;  %v1107_v41 = vmul.f32 %v1089_v28, %v2089_v16  ;;  %v1229_v58 = vld [vmem:[#allocation5 + $0x80] sm:$0xff] }
 0x3dd   : > { %1762 = vmatprep.subr.mxu1 %v1229_v58 }
 0x3de   : > { %v1092_v36 = vmul.f32 %v1088_v34, %v1038_v60  ;;  %v1103_v37 = vsub.f32 %v1500_v33, %v1093_v35  ;;  %v1106_v39 = vmul.f32 %v1088_v34, %v2092_v18  ;;  %1763 = vmatpush3.msra.mxu1 %v1229_v58 }
 0x3e0   : > { %v1102_v38 = vsub.f32 %v1500_v33, %v1092_v36  ;;  %v1111_v45 = vadd.f32 %v1107_v41, %v1103_v37 }
 0x3e1   : > { %v1814_v40 = vpop.eup %1813 }
 0x3e2   : > { %v1110_v42 = vadd.f32 %v1106_v39, %v1102_v38  ;;  %v1091_v43 = vmul.f32 %v1814_v40, %v1499_v31 }
 0x3e3   : > { %v1816_v44 = vpop.eup %1815 }
 0x3e4   : > { %1726 = vmatprep.mubr.f32.mxu0 %v1110_v42  ;;  %v1090_v46 = vmul.f32 %v1816_v44, %v1499_v31  ;;  %v1095_v47 = vmul.f32 %v1091_v43, %v1041_v7  ;;  %v1109_v52 = vmul.f32 %v1091_v43, %v2101_v19 }
 0x3e5   : > { %1727 = vmatmul.mubr.f32.vlgmr.msra.gmra.mxu0 %v1111_v45 }
 0x3e6   : > { %v1094_v48 = vmul.f32 %v1090_v46, %v1040_v11  ;;  %v1105_v49 = vsub.f32 %v1500_v33, %v1095_v47  ;;  %v1108_v51 = vmul.f32 %v1090_v46, %v2104_v23 }
 0x3e8   : > { %v1104_v50 = vsub.f32 %v1500_v33, %v1094_v48  ;;  %v1113_v54 = vadd.f32 %v1109_v52, %v1105_v49 }
 0x3ea   : > { %v1112_v53 = vadd.f32 %v1108_v51, %v1104_v50 }
 0x3ec   : > { %1729 = vmatprep.mubr.f32.mxu0 %v1112_v53 }
 0x3ed   : > { %1730 = vmatmul.mubr.f32.gmra.mxu0 %v1113_v54 }
 0x4a5   : > { %v1728_v60 = vpop.f32.mrf.mxu0 }
 0x4a6   : > { %v1211_v61 = vadd.f32 %v1728_v60, %v1502_v59 }
 0x4a7   : > { %v1205_v62 = vpop.f32.mrf.mxu0 }
 0x4a8   : > { %v1206_v63 = vadd.f32 %v1502_v59, %v1205_v62  ;;  %v1225_v1 = vmax.f32 %v1211_v61, 0.0 }
 0x4aa   : > { %v1224_v0 = vmax.f32 %v1206_v63, 0.0 }
 0x4ac   : > { %1764 = vmatprep.mubr.f32.mxu1 %v1224_v0 }
 0x4ad   : > { %v1731_v2 = vpop.f32.mrf.mxu0  ;;  %1765 = vmatmul.mubr.f32.vlgmr.msra.gmra.mxu1 %v1225_v1 }
 0x4ae   : > { %v1221_v3 = vadd.f32 %v1731_v2, %v1502_v59 }
 0x4af   : > { %v1215_v4 = vpop.f32.mrf.mxu0 }
 0x4b0   : > { %v1216_v5 = vadd.f32 %v1502_v59, %v1215_v4  ;;  %v1227_v7 = vmax.f32 %v1221_v3, 0.0 }
 0x4b2   : > { %v1226_v6 = vmax.f32 %v1216_v5, 0.0 }
 0x4b4   : > { %1767 = vmatprep.mubr.f32.mxu1 %v1226_v6 }
 0x4b5   : > { %1768 = vmatmul.mubr.f32.gmra.mxu1 %v1227_v7 }
 0x56d   : > { %v1766_v9 = vpop.f32.mrf.mxu1 }
 0x56e   : > { %v1325_v10 = vadd.f32 %v1766_v9, %v1504_v8 }
 0x56f   : > { %v1319_v11 = vpop.f32.mrf.mxu1 }
 0x570   : > { %v1339_v13 = vadd.f32 %v1325_v10, %v2089_v16  ;;  %v1320_v14 = vadd.f32 %v1504_v8, %v1319_v11  ;;  %v1506_v16 = vld [vmem:[#allocation2] ss:$0 sm:$0xff] }
 0x572   : > { %v1338_v15 = vadd.f32 %v1320_v14, %v2092_v18  ;;  %v1350_v17 = vmul.f32 %v1505_v12, %v1339_v13 }
 0x574   : > { %1355 = vadd.xlane.f32.xlu1 %v1350_v17  ;;  %v1349_v20 = vmul.f32 %v1505_v12, %v1338_v15 }
 0x575   : > { %v1769_v21 = vpop.f32.mrf.mxu1 }
 0x576   : > { %v1335_v22 = vadd.f32 %v1769_v21, %v1504_v8  ;;  %1353 = vadd.xlane.f32.xlu0 %v1349_v20 }
 0x577   : > { %v1329_v24 = vpop.f32.mrf.mxu1 }
 0x578   : > { %v1341_v25 = vadd.f32 %v1335_v22, %v2101_v19  ;;  %v1330_v26 = vadd.f32 %v1504_v8, %v1329_v24 }
 0x57a   : > { %v1340_v27 = vadd.f32 %v1330_v26, %v2104_v23  ;;  %v1352_v29 = vmul.f32 %v1505_v12, %v1341_v25 }
 0x57c   : > { %1359 = vadd.xlane.f32.xlu1 %v1352_v29  ;;  %v1351_v31 = vmul.f32 %v1505_v12, %v1340_v27 }
 0x57e   : > { %1357 = vadd.xlane.f32.xlu0 %v1351_v31 }
 0x5fd   : > { %v1356_v30 = vpop.xlane.xlu1 %1355 }
 0x5fe   : > { %v1369_v32 = vadd.f32 %v1506_v16, %v1356_v30 }
 0x5ff   : > { %v1354_v18 = vpop.xlane.xlu0 %1353 }
 0x600   : > { %v1368_v28 = vadd.f32 %v1506_v16, %v1354_v18  ;;  %1374 = vst.msk [vmem:[%s496_s15 + $0x8] sm:$0xff] %vm1372_vm3, %v1369_v32 }
 0x602   : > { %1373 = vst.msk [vmem:[%s496_s15] sm:$0xff] %vm1372_vm3, %v1368_v28 }
 0x605   : > { %v1360_v19 = vpop.xlane.xlu1 %1359 }
 0x606   : > { %v1371_v23 = vadd.f32 %v1506_v16, %v1360_v19 }
 0x607   : > { %v1358_v33 = vpop.xlane.xlu0 %1357 }
 0x608   : > { %v1370_v34 = vadd.f32 %v1506_v16, %v1358_v33  ;;  %1376 = vst.msk [vmem:[%s496_s15 + $0x18] sm:$0xff] %vm1372_vm3, %v1371_v23 }
 0x60a   : > { %1375 = vst.msk [vmem:[%s496_s15 + $0x10] sm:$0xff] %vm1372_vm3, %v1370_v34 }
 0x60b PF: > { %s27_s27 = sadd.s32 1, %s1883_s27  }
 0x60c   : > { %p24_p2 = scmp.ge.s32.totalorder %s27_s27, 4  }
 0x60e   :  { %26 = sbr.rel (!%p24_p2) target bundleno = 5 (0x5), region = 120 }
 0x613   :  { %1399 = vsyncpa [#allocation4], 1 }
 0x614   :  { %1401 = vsyncpa [#allocation4 + $0x1], 1 }
 0x615   :  { %1402 = vsyncpa [#allocation6], 1 }

</bundles_post_ra>
